<compile_context>
chip_gen: v5e
topology: v5e:2x2
jax: 0.10.0
libtpu: 0.0.40
codegen_flags: <defaults>
</compile_context>

<pallas_src>
import functools

import jax
import jax.numpy as jnp
from jax import lax
from jax.experimental import pallas as pl
from jax.experimental.pallas import tpu as pltpu

# ---------------------------------------------------------------------------
# SMPL_ALL_54 joint indices (Crowd3DNet / ROMP constants)
# ---------------------------------------------------------------------------
L_KNEE, R_KNEE = 4, 5
L_ANKLE, R_ANKLE = 7, 8
L_SHOULDER, R_SHOULDER = 16, 17
R_HIP, L_HIP = 45, 46          # SMPL_ALL_54['R_Hip'] / ['L_Hip']

_COS_EPS = 1e-8                # torch.cosine_similarity default eps

# Joints gathered in the wrapper, in slab order. Row index = joint_slot*3 + xyz.
_GATHER_JOINTS = [L_ANKLE, R_ANKLE, L_KNEE, R_KNEE, L_HIP, R_HIP, L_SHOULDER, R_SHOULDER]
_GATHER_IDX = jnp.array(_GATHER_JOINTS, dtype=jnp.int32)
_LA, _RA, _LK, _RK, _LH, _RH, _LS, _RS = [3 * i for i in range(8)]
_NROWS = 3 * len(_GATHER_JOINTS)   # 24 joint-component rows

_SUB = 8                 # sublanes per tile (vreg height)
_MAX_LANES = 1024        # lanes per tile -> 8192 batch elems / ~0.9 MB per step


# ---------------------------------------------------------------------------
# small xyz-triple helpers (each component is a vreg-dense (8, LANES) block)
# ---------------------------------------------------------------------------
def _vec3(ref, base):
    return (ref[base], ref[base + 1], ref[base + 2])


def _vsub(a, b):
    return (a[0] - b[0], a[1] - b[1], a[2] - b[2])


def _vdot(a, b):
    return a[0] * b[0] + a[1] * b[1] + a[2] * b[2]


def _cos_sim(a, b):
    # PyTorch cosine_similarity semantics:
    #   dot / sqrt(max(|a|^2 * |b|^2, eps^2))
    # One rsqrt per pair -> single EUP op (free slot) per similarity.
    dot = _vdot(a, b)
    n2 = _vdot(a, a) * _vdot(b, b)
    return dot * lax.rsqrt(jnp.maximum(n2, _COS_EPS * _COS_EPS))


# ---------------------------------------------------------------------------
# Pallas kernel: masked partial sums of the two cosine-similarity losses
# ---------------------------------------------------------------------------
def _j3d_losses_kernel(joints_ref, gn_ref, out_ref, *, batch_size, sub, lanes):
    # joints_ref: (24, sub, lanes) f32   gn_ref: (3, sub, lanes) f32
    # out_ref:    (2,) f32 in SMEM (resident accumulator across the grid)
    g = pl.program_id(0)

    @pl.when(g == 0)
    def _init():
        out_ref[0] = 0.0
        out_ref[1] = 0.0

    la, ra = _vec3(joints_ref, _LA), _vec3(joints_ref, _RA)
    lk, rk = _vec3(joints_ref, _LK), _vec3(joints_ref, _RK)
    lh, rh = _vec3(joints_ref, _LH), _vec3(joints_ref, _RH)
    ls, rs = _vec3(joints_ref, _LS), _vec3(joints_ref, _RS)
    gn = _vec3(gn_ref, 0)

    # ---- _calc_ground_normal_loss ----
    # person_direct = mean(shoulders) - mean(ankles); the 0.5 scale is dropped
    # because cosine similarity is scale-invariant.
    person_direct = tuple(
        (sl + sr) - (al + ar) for sl, sr, al, ar in zip(ls, rs, la, ra)
    )
    sim_g = _cos_sim(person_direct, gn)                      # (sub, lanes)

    # ---- _blend_cost (used by _calc_bend_leg_loss) ----
    def leg_sim(ankle, knee, hip, tre=1.0):
        v1 = _vsub(knee, hip)
        v2 = _vsub(ankle, knee)
        sim = _cos_sim(v1, v2)
        # sim>tre -> 1 and sim<0 -> 1, merged into a single select
        return jnp.where((sim > tre) | (sim < 0.0), 1.0, sim)

    sim_bend = leg_sim(la, lk, lh) + leg_sim(ra, rk, rh)     # (sub, lanes)

    # ---- mask out batch padding and accumulate masked sums ----
    srow = lax.broadcasted_iota(jnp.int32, sim_g.shape, 0)
    lcol = lax.broadcasted_iota(jnp.int32, sim_g.shape, 1)
    bidx = (g * sub + srow) * lanes + lcol
    valid = bidx < batch_size

    out_ref[0] += jnp.sum(jnp.where(valid, sim_g, 0.0))
    out_ref[1] += jnp.sum(jnp.where(valid, sim_bend, 0.0))


def j3d_losses(j3d, ground):
    """Run the Pallas kernel. Returns (ground_normal_loss, bend_leg_loss) scalars."""
    B = j3d.shape[0]

    # Tile selection: one (SUB, lanes) fold of the batch per grid step.
    if B <= _SUB * _MAX_LANES:
        lanes = max(128, int(pl.cdiv(B, _SUB * 128)) * 128)
    else:
        lanes = _MAX_LANES
    tile_b = _SUB * lanes
    steps = int(pl.cdiv(B, tile_b))
    b_pad = steps * tile_b

    # Wrapper-side layout plumbing only (single copy pass): gather the 8 needed
    # joints, pad the batch, transpose so the batch folds onto (sublane, lane).
    # TODO(synk): optionally emit bf16 here (halves the kernel's HBM read) once
    # loss tolerance in bf16 is validated.
    joints = j3d[:, _GATHER_IDX, :].reshape(B, _NROWS).astype(jnp.float32)   # (B, 24)
    gN = ground[:, :3].astype(jnp.float32)                                   # (B, 3)
    if b_pad != B:
        joints = jnp.pad(joints, ((0, b_pad - B), (0, 0)))
        gN = jnp.pad(gN, ((0, b_pad - B), (0, 0)))
    joints_slab = joints.T.reshape(_NROWS, steps * _SUB, lanes)              # (24, S*8, L)
    gn_slab = gN.T.reshape(3, steps * _SUB, lanes)                           # (3,  S*8, L)

    kernel = functools.partial(
        _j3d_losses_kernel, batch_size=B, sub=_SUB, lanes=lanes)

    # TODO(synk): on v7x, add a leading size-2 "parallel"/CORE_PARALLEL grid axis
    # with per-core partial sums to shard the HBM-bound stream over both TCs.
    sums = pl.pallas_call(
        kernel,
        out_shape=jax.ShapeDtypeStruct((2,), jnp.float32),
        grid_spec=pltpu.PrefetchScalarGridSpec(
            num_scalar_prefetch=0,
            grid=(steps,),
            in_specs=[
                pl.BlockSpec((_NROWS, _SUB, lanes), lambda g: (0, g, 0)),
                pl.BlockSpec((3, _SUB, lanes), lambda g: (0, g, 0)),
            ],
            out_specs=pl.BlockSpec(memory_space=pltpu.MemorySpace.SMEM),
        ),
        compiler_params=pltpu.CompilerParams(
            dimension_semantics=("arbitrary",)),
    )(joints_slab, gn_slab)

    inv_b = 1.0 / B
    gn_loss = 1.0 - sums[0] * inv_b          # mean(1 - sim)  = 1 - sum/B
    bend_loss = 2.0 - sums[1] * inv_b        # sum of two mean(1 - sim) terms
    return gn_loss, bend_loss


# ---------------------------------------------------------------------------
# Loss module wrapper (glue in plain JAX)
# ---------------------------------------------------------------------------
class LossPallas:
    def __init__(self):
        # Deterministic synthetic stand-ins for the parameters built in __init__.
        self.joint_lossweights = jnp.ones((54,), jnp.float32)     # constants.SMPL54_weights stand-in
        self.shape_pca_weight = jnp.array(
            [[1, 0.32, 0.16, 0.16, 0.08, 0.08, 0.08, 0.04, 0.02, 0.01]], jnp.float32
        )
        self.align_inds_MPJPE = jnp.array([L_HIP, R_HIP], jnp.int32)
        # TODO(synk): MaxMixturePrior (8-component GMM over SMPL pose) needs external
        # prior data (smpl_model_path); no clean in-script / Pallas equivalent.
        self.loss_weights = {"ground_normal": 1.0}                # args().ground_normal_weight stand-in

    def forward(self, outputs, meta_data):
        loss_dict = {}
        # TODO(synk): focal_loss, batch_kp_2d_l2_loss, batch_bbox_2d_l2_loss,
        # calc_mpjpe, calc_pampjpe, batch_l2_loss_param, angle_prior,
        # compute_side_ground_loss are external Crowd3DNet utilities not provided;
        # their loss terms are returned as zeros.
        for name in ["CenterMap", "P_KP2D", "MPJPE", "PAMPJPE", "Pose", "Shape",
                     "Prior", "hvip2d", "out_of_bound", "root_cam", "tc_offset"]:
            loss_dict[name] = jnp.zeros((), jnp.float32)

        gn_loss, bend_loss = j3d_losses(outputs["j3d"], meta_data["ground"])
        loss_dict["ground_normal"] = gn_loss * self.loss_weights["ground_normal"]
        # bend_leg is produced by the same fused kernel (_calc_bend_leg_loss)
        self.bend_leg_loss = bend_loss

        kp_error = None
        return {"loss_dict": loss_dict, "kp_error": kp_error}


# ---------------------------------------------------------------------------
# Pure-JAX reference (PyTorch cosine_similarity semantics) for correctness check
# ---------------------------------------------------------------------------
def _ref_cos_sim(a, b, eps=_COS_EPS):
    dot = jnp.sum(a * b, axis=-1)
    n2 = jnp.sum(a * a, axis=-1) * jnp.sum(b * b, axis=-1)
    return dot / jnp.sqrt(jnp.maximum(n2, eps * eps))


def _ref_losses(j3d, ground):
    gN = ground[:, :3]
    pd = 0.5 * (j3d[:, L_SHOULDER] + j3d[:, R_SHOULDER]) \
        - 0.5 * (j3d[:, L_ANKLE] + j3d[:, R_ANKLE])
    gn = jnp.mean(1.0 - _ref_cos_sim(pd, gN))

    def blend(a, k, h, tre=1.0):
        s = _ref_cos_sim(k - h, a - k)
        s = jnp.where(s > tre, 1.0, s)
        s = jnp.where(s < 0.0, 1.0, s)
        return jnp.mean(1.0 - s)

    bl = blend(j3d[:, L_ANKLE], j3d[:, L_KNEE], j3d[:, L_HIP]) + \
         blend(j3d[:, R_ANKLE], j3d[:, R_KNEE], j3d[:, R_HIP])
    return gn, bl


if __name__ == "__main__":
    key = jax.random.PRNGKey(0)
    k1, k2, k3, k4 = jax.random.split(key, 4)

    # --- module-level check at a small batch through the Loss wrapper ---
    B, J = 8, 54
    j3d = jax.random.normal(k1, (B, J, 3), dtype=jnp.float32)    # outputs['j3d']
    ground = jax.random.normal(k2, (B, 4), dtype=jnp.float32)    # meta_data['ground']

    outputs = {"j3d": j3d}
    meta_data = {"ground": ground}

    loss_mod = LossPallas()
    result = loss_mod.forward(outputs, meta_data)
    jax.block_until_ready(result["loss_dict"]["ground_normal"])
    jax.block_until_ready(loss_mod.bend_leg_loss)

    gn_ref, bl_ref = _ref_losses(j3d, ground)
    assert jnp.allclose(result["loss_dict"]["ground_normal"], gn_ref, atol=1e-5)
    assert jnp.allclose(loss_mod.bend_leg_loss, bl_ref, atol=1e-5)

    # --- extra check: non-multiple batch size exercises the padding mask ---
    B2 = 203
    j3d2 = jax.random.normal(k3, (B2, J, 3), dtype=jnp.float32)
    ground2 = jax.random.normal(k4, (B2, 4), dtype=jnp.float32)
    gn2, bl2 = j3d_losses(j3d2, ground2)
    jax.block_until_ready(gn2)
    gn2_ref, bl2_ref = _ref_losses(j3d2, ground2)
    assert jnp.allclose(gn2, gn2_ref, atol=1e-5)
    assert jnp.allclose(bl2, bl2_ref, atol=1e-5)

    print("KERNEL_OK")
</pallas_src>

<mosaic_0001>
module attributes {stable_mosaic.version = 11 : i64} {
  func.func @_j3d_losses_kernel(%arg0: i32, %arg1: memref<24x8x128xf32, #tpu.memory_space<vmem>>, %arg2: memref<3x8x128xf32, #tpu.memory_space<vmem>>, %arg3: memref<2xf32, #tpu.memory_space<smem>>) attributes {dimension_semantics = [#tpu.dimension_semantics<arbitrary>], iteration_bounds = array<i64: 1>, scalar_prefetch = 0 : i64, scratch_operands = 0 : i64, tpu.core_type = #tpu.core_type<tc>, window_params = [{transform_indices = @transform_0, window_bounds = array<i64: 24, 8, 128>}, {transform_indices = @transform_1, window_bounds = array<i64: 3, 8, 128>}, {transform_indices = @transform_2, window_bounds = array<i64: 2>}]} {
    %c0_i32 = arith.constant 0 : i32
    %0 = arith.cmpi eq, %arg0, %c0_i32 : i32
    %1 = arith.extui %0 : i1 to i32
    %c0_i32_0 = arith.constant 0 : i32
    %2 = arith.cmpi ne, %1, %c0_i32_0 : i32
    scf.if %2 {
      %cst_75 = arith.constant 0.000000e+00 : f32
      %c0_76 = arith.constant 0 : index
      %181 = memref.load %arg3[%c0_76] : memref<2xf32, #tpu.memory_space<smem>>
      memref.store %cst_75, %arg3[%c0_76] : memref<2xf32, #tpu.memory_space<smem>>
      %cst_77 = arith.constant 0.000000e+00 : f32
      %c1_78 = arith.constant 1 : index
      %182 = memref.load %arg3[%c1_78] : memref<2xf32, #tpu.memory_space<smem>>
      memref.store %cst_77, %arg3[%c1_78] : memref<2xf32, #tpu.memory_space<smem>>
    } else {
    }
    %c0 = arith.constant 0 : index
    %c0_1 = arith.constant 0 : index
    %c0_2 = arith.constant 0 : index
    %3 = vector.load %arg1[%c0, %c0_1, %c0_2] : memref<24x8x128xf32, #tpu.memory_space<vmem>>, vector<1x8x128xf32>
    %4 = vector.shape_cast %3 : vector<1x8x128xf32> to vector<8x128xf32>
    %c1 = arith.constant 1 : index
    %c0_3 = arith.constant 0 : index
    %c0_4 = arith.constant 0 : index
    %5 = vector.load %arg1[%c1, %c0_3, %c0_4] : memref<24x8x128xf32, #tpu.memory_space<vmem>>, vector<1x8x128xf32>
    %6 = vector.shape_cast %5 : vector<1x8x128xf32> to vector<8x128xf32>
    %c2 = arith.constant 2 : index
    %c0_5 = arith.constant 0 : index
    %c0_6 = arith.constant 0 : index
    %7 = vector.load %arg1[%c2, %c0_5, %c0_6] : memref<24x8x128xf32, #tpu.memory_space<vmem>>, vector<1x8x128xf32>
    %8 = vector.shape_cast %7 : vector<1x8x128xf32> to vector<8x128xf32>
    %c3 = arith.constant 3 : index
    %c0_7 = arith.constant 0 : index
    %c0_8 = arith.constant 0 : index
    %9 = vector.load %arg1[%c3, %c0_7, %c0_8] : memref<24x8x128xf32, #tpu.memory_space<vmem>>, vector<1x8x128xf32>
    %10 = vector.shape_cast %9 : vector<1x8x128xf32> to vector<8x128xf32>
    %c4 = arith.constant 4 : index
    %c0_9 = arith.constant 0 : index
    %c0_10 = arith.constant 0 : index
    %11 = vector.load %arg1[%c4, %c0_9, %c0_10] : memref<24x8x128xf32, #tpu.memory_space<vmem>>, vector<1x8x128xf32>
    %12 = vector.shape_cast %11 : vector<1x8x128xf32> to vector<8x128xf32>
    %c5 = arith.constant 5 : index
    %c0_11 = arith.constant 0 : index
    %c0_12 = arith.constant 0 : index
    %13 = vector.load %arg1[%c5, %c0_11, %c0_12] : memref<24x8x128xf32, #tpu.memory_space<vmem>>, vector<1x8x128xf32>
    %14 = vector.shape_cast %13 : vector<1x8x128xf32> to vector<8x128xf32>
    %c6 = arith.constant 6 : index
    %c0_13 = arith.constant 0 : index
    %c0_14 = arith.constant 0 : index
    %15 = vector.load %arg1[%c6, %c0_13, %c0_14] : memref<24x8x128xf32, #tpu.memory_space<vmem>>, vector<1x8x128xf32>
    %16 = vector.shape_cast %15 : vector<1x8x128xf32> to vector<8x128xf32>
    %c7 = arith.constant 7 : index
    %c0_15 = arith.constant 0 : index
    %c0_16 = arith.constant 0 : index
    %17 = vector.load %arg1[%c7, %c0_15, %c0_16] : memref<24x8x128xf32, #tpu.memory_space<vmem>>, vector<1x8x128xf32>
    %18 = vector.shape_cast %17 : vector<1x8x128xf32> to vector<8x128xf32>
    %c8 = arith.constant 8 : index
    %c0_17 = arith.constant 0 : index
    %c0_18 = arith.constant 0 : index
    %19 = vector.load %arg1[%c8, %c0_17, %c0_18] : memref<24x8x128xf32, #tpu.memory_space<vmem>>, vector<1x8x128xf32>
    %20 = vector.shape_cast %19 : vector<1x8x128xf32> to vector<8x128xf32>
    %c9 = arith.constant 9 : index
    %c0_19 = arith.constant 0 : index
    %c0_20 = arith.constant 0 : index
    %21 = vector.load %arg1[%c9, %c0_19, %c0_20] : memref<24x8x128xf32, #tpu.memory_space<vmem>>, vector<1x8x128xf32>
    %22 = vector.shape_cast %21 : vector<1x8x128xf32> to vector<8x128xf32>
    %c10 = arith.constant 10 : index
    %c0_21 = arith.constant 0 : index
    %c0_22 = arith.constant 0 : index
    %23 = vector.load %arg1[%c10, %c0_21, %c0_22] : memref<24x8x128xf32, #tpu.memory_space<vmem>>, vector<1x8x128xf32>
    %24 = vector.shape_cast %23 : vector<1x8x128xf32> to vector<8x128xf32>
    %c11 = arith.constant 11 : index
    %c0_23 = arith.constant 0 : index
    %c0_24 = arith.constant 0 : index
    %25 = vector.load %arg1[%c11, %c0_23, %c0_24] : memref<24x8x128xf32, #tpu.memory_space<vmem>>, vector<1x8x128xf32>
    %26 = vector.shape_cast %25 : vector<1x8x128xf32> to vector<8x128xf32>
    %c12 = arith.constant 12 : index
    %c0_25 = arith.constant 0 : index
    %c0_26 = arith.constant 0 : index
    %27 = vector.load %arg1[%c12, %c0_25, %c0_26] : memref<24x8x128xf32, #tpu.memory_space<vmem>>, vector<1x8x128xf32>
    %28 = vector.shape_cast %27 : vector<1x8x128xf32> to vector<8x128xf32>
    %c13 = arith.constant 13 : index
    %c0_27 = arith.constant 0 : index
    %c0_28 = arith.constant 0 : index
    %29 = vector.load %arg1[%c13, %c0_27, %c0_28] : memref<24x8x128xf32, #tpu.memory_space<vmem>>, vector<1x8x128xf32>
    %30 = vector.shape_cast %29 : vector<1x8x128xf32> to vector<8x128xf32>
    %c14 = arith.constant 14 : index
    %c0_29 = arith.constant 0 : index
    %c0_30 = arith.constant 0 : index
    %31 = vector.load %arg1[%c14, %c0_29, %c0_30] : memref<24x8x128xf32, #tpu.memory_space<vmem>>, vector<1x8x128xf32>
    %32 = vector.shape_cast %31 : vector<1x8x128xf32> to vector<8x128xf32>
    %c15 = arith.constant 15 : index
    %c0_31 = arith.constant 0 : index
    %c0_32 = arith.constant 0 : index
    %33 = vector.load %arg1[%c15, %c0_31, %c0_32] : memref<24x8x128xf32, #tpu.memory_space<vmem>>, vector<1x8x128xf32>
    %34 = vector.shape_cast %33 : vector<1x8x128xf32> to vector<8x128xf32>
    %c16 = arith.constant 16 : index
    %c0_33 = arith.constant 0 : index
    %c0_34 = arith.constant 0 : index
    %35 = vector.load %arg1[%c16, %c0_33, %c0_34] : memref<24x8x128xf32, #tpu.memory_space<vmem>>, vector<1x8x128xf32>
    %36 = vector.shape_cast %35 : vector<1x8x128xf32> to vector<8x128xf32>
    %c17 = arith.constant 17 : index
    %c0_35 = arith.constant 0 : index
    %c0_36 = arith.constant 0 : index
    %37 = vector.load %arg1[%c17, %c0_35, %c0_36] : memref<24x8x128xf32, #tpu.memory_space<vmem>>, vector<1x8x128xf32>
    %38 = vector.shape_cast %37 : vector<1x8x128xf32> to vector<8x128xf32>
    %c18 = arith.constant 18 : index
    %c0_37 = arith.constant 0 : index
    %c0_38 = arith.constant 0 : index
    %39 = vector.load %arg1[%c18, %c0_37, %c0_38] : memref<24x8x128xf32, #tpu.memory_space<vmem>>, vector<1x8x128xf32>
    %40 = vector.shape_cast %39 : vector<1x8x128xf32> to vector<8x128xf32>
    %c19 = arith.constant 19 : index
    %c0_39 = arith.constant 0 : index
    %c0_40 = arith.constant 0 : index
    %41 = vector.load %arg1[%c19, %c0_39, %c0_40] : memref<24x8x128xf32, #tpu.memory_space<vmem>>, vector<1x8x128xf32>
    %42 = vector.shape_cast %41 : vector<1x8x128xf32> to vector<8x128xf32>
    %c20 = arith.constant 20 : index
    %c0_41 = arith.constant 0 : index
    %c0_42 = arith.constant 0 : index
    %43 = vector.load %arg1[%c20, %c0_41, %c0_42] : memref<24x8x128xf32, #tpu.memory_space<vmem>>, vector<1x8x128xf32>
    %44 = vector.shape_cast %43 : vector<1x8x128xf32> to vector<8x128xf32>
    %c21 = arith.constant 21 : index
    %c0_43 = arith.constant 0 : index
    %c0_44 = arith.constant 0 : index
    %45 = vector.load %arg1[%c21, %c0_43, %c0_44] : memref<24x8x128xf32, #tpu.memory_space<vmem>>, vector<1x8x128xf32>
    %46 = vector.shape_cast %45 : vector<1x8x128xf32> to vector<8x128xf32>
    %c22 = arith.constant 22 : index
    %c0_45 = arith.constant 0 : index
    %c0_46 = arith.constant 0 : index
    %47 = vector.load %arg1[%c22, %c0_45, %c0_46] : memref<24x8x128xf32, #tpu.memory_space<vmem>>, vector<1x8x128xf32>
    %48 = vector.shape_cast %47 : vector<1x8x128xf32> to vector<8x128xf32>
    %c23 = arith.constant 23 : index
    %c0_47 = arith.constant 0 : index
    %c0_48 = arith.constant 0 : index
    %49 = vector.load %arg1[%c23, %c0_47, %c0_48] : memref<24x8x128xf32, #tpu.memory_space<vmem>>, vector<1x8x128xf32>
    %50 = vector.shape_cast %49 : vector<1x8x128xf32> to vector<8x128xf32>
    %c0_49 = arith.constant 0 : index
    %c0_50 = arith.constant 0 : index
    %c0_51 = arith.constant 0 : index
    %51 = vector.load %arg2[%c0_49, %c0_50, %c0_51] : memref<3x8x128xf32, #tpu.memory_space<vmem>>, vector<1x8x128xf32>
    %52 = vector.shape_cast %51 : vector<1x8x128xf32> to vector<8x128xf32>
    %c1_52 = arith.constant 1 : index
    %c0_53 = arith.constant 0 : index
    %c0_54 = arith.constant 0 : index
    %53 = vector.load %arg2[%c1_52, %c0_53, %c0_54] : memref<3x8x128xf32, #tpu.memory_space<vmem>>, vector<1x8x128xf32>
    %54 = vector.shape_cast %53 : vector<1x8x128xf32> to vector<8x128xf32>
    %c2_55 = arith.constant 2 : index
    %c0_56 = arith.constant 0 : index
    %c0_57 = arith.constant 0 : index
    %55 = vector.load %arg2[%c2_55, %c0_56, %c0_57] : memref<3x8x128xf32, #tpu.memory_space<vmem>>, vector<1x8x128xf32>
    %56 = vector.shape_cast %55 : vector<1x8x128xf32> to vector<8x128xf32>
    %57 = arith.addf %40, %46 : vector<8x128xf32>
    %58 = arith.addf %4, %10 : vector<8x128xf32>
    %59 = arith.subf %57, %58 : vector<8x128xf32>
    %60 = arith.addf %42, %48 : vector<8x128xf32>
    %61 = arith.addf %6, %12 : vector<8x128xf32>
    %62 = arith.subf %60, %61 : vector<8x128xf32>
    %63 = arith.addf %44, %50 : vector<8x128xf32>
    %64 = arith.addf %8, %14 : vector<8x128xf32>
    %65 = arith.subf %63, %64 : vector<8x128xf32>
    %66 = arith.mulf %59, %52 : vector<8x128xf32>
    %67 = arith.mulf %62, %54 : vector<8x128xf32>
    %68 = arith.addf %66, %67 : vector<8x128xf32>
    %69 = arith.mulf %65, %56 : vector<8x128xf32>
    %70 = arith.addf %68, %69 : vector<8x128xf32>
    %71 = arith.mulf %59, %59 : vector<8x128xf32>
    %72 = arith.mulf %62, %62 : vector<8x128xf32>
    %73 = arith.addf %71, %72 : vector<8x128xf32>
    %74 = arith.mulf %65, %65 : vector<8x128xf32>
    %75 = arith.addf %73, %74 : vector<8x128xf32>
    %76 = arith.mulf %52, %52 : vector<8x128xf32>
    %77 = arith.mulf %54, %54 : vector<8x128xf32>
    %78 = arith.addf %76, %77 : vector<8x128xf32>
    %79 = arith.mulf %56, %56 : vector<8x128xf32>
    %80 = arith.addf %78, %79 : vector<8x128xf32>
    %81 = arith.mulf %75, %80 : vector<8x128xf32>
    %cst = arith.constant 1.000000e-16 : f32
    %82 = vector.broadcast %cst : f32 to vector<8x128xf32>
    %83 = arith.maximumf %81, %82 : vector<8x128xf32>
    %84 = math.rsqrt %83 : vector<8x128xf32>
    %85 = arith.mulf %70, %84 : vector<8x128xf32>
    %86 = arith.subf %16, %28 : vector<8x128xf32>
    %87 = arith.subf %18, %30 : vector<8x128xf32>
    %88 = arith.subf %20, %32 : vector<8x128xf32>
    %89 = arith.subf %4, %16 : vector<8x128xf32>
    %90 = arith.subf %6, %18 : vector<8x128xf32>
    %91 = arith.subf %8, %20 : vector<8x128xf32>
    %92 = arith.mulf %86, %89 : vector<8x128xf32>
    %93 = arith.mulf %87, %90 : vector<8x128xf32>
    %94 = arith.addf %92, %93 : vector<8x128xf32>
    %95 = arith.mulf %88, %91 : vector<8x128xf32>
    %96 = arith.addf %94, %95 : vector<8x128xf32>
    %97 = arith.mulf %86, %86 : vector<8x128xf32>
    %98 = arith.mulf %87, %87 : vector<8x128xf32>
    %99 = arith.addf %97, %98 : vector<8x128xf32>
    %100 = arith.mulf %88, %88 : vector<8x128xf32>
    %101 = arith.addf %99, %100 : vector<8x128xf32>
    %102 = arith.mulf %89, %89 : vector<8x128xf32>
    %103 = arith.mulf %90, %90 : vector<8x128xf32>
    %104 = arith.addf %102, %103 : vector<8x128xf32>
    %105 = arith.mulf %91, %91 : vector<8x128xf32>
    %106 = arith.addf %104, %105 : vector<8x128xf32>
    %107 = arith.mulf %101, %106 : vector<8x128xf32>
    %cst_58 = arith.constant 1.000000e-16 : f32
    %108 = vector.broadcast %cst_58 : f32 to vector<8x128xf32>
    %109 = arith.maximumf %107, %108 : vector<8x128xf32>
    %110 = math.rsqrt %109 : vector<8x128xf32>
    %111 = arith.mulf %96, %110 : vector<8x128xf32>
    %cst_59 = arith.constant 1.000000e+00 : f32
    %112 = vector.broadcast %cst_59 : f32 to vector<8x128xf32>
    %113 = arith.cmpf ogt, %111, %112 : vector<8x128xf32>
    %cst_60 = arith.constant 0.000000e+00 : f32
    %114 = vector.broadcast %cst_60 : f32 to vector<8x128xf32>
    %115 = arith.cmpf olt, %111, %114 : vector<8x128xf32>
    %116 = arith.ori %113, %115 : vector<8x128xi1>
    %cst_61 = arith.constant 1.000000e+00 : f32
    %117 = vector.broadcast %cst_61 : f32 to vector<8x128xf32>
    %118 = arith.select %116, %117, %111 : vector<8x128xi1>, vector<8x128xf32>
    %119 = arith.subf %22, %34 : vector<8x128xf32>
    %120 = arith.subf %24, %36 : vector<8x128xf32>
    %121 = arith.subf %26, %38 : vector<8x128xf32>
    %122 = arith.subf %10, %22 : vector<8x128xf32>
    %123 = arith.subf %12, %24 : vector<8x128xf32>
    %124 = arith.subf %14, %26 : vector<8x128xf32>
    %125 = arith.mulf %119, %122 : vector<8x128xf32>
    %126 = arith.mulf %120, %123 : vector<8x128xf32>
    %127 = arith.addf %125, %126 : vector<8x128xf32>
    %128 = arith.mulf %121, %124 : vector<8x128xf32>
    %129 = arith.addf %127, %128 : vector<8x128xf32>
    %130 = arith.mulf %119, %119 : vector<8x128xf32>
    %131 = arith.mulf %120, %120 : vector<8x128xf32>
    %132 = arith.addf %130, %131 : vector<8x128xf32>
    %133 = arith.mulf %121, %121 : vector<8x128xf32>
    %134 = arith.addf %132, %133 : vector<8x128xf32>
    %135 = arith.mulf %122, %122 : vector<8x128xf32>
    %136 = arith.mulf %123, %123 : vector<8x128xf32>
    %137 = arith.addf %135, %136 : vector<8x128xf32>
    %138 = arith.mulf %124, %124 : vector<8x128xf32>
    %139 = arith.addf %137, %138 : vector<8x128xf32>
    %140 = arith.mulf %134, %139 : vector<8x128xf32>
    %cst_62 = arith.constant 1.000000e-16 : f32
    %141 = vector.broadcast %cst_62 : f32 to vector<8x128xf32>
    %142 = arith.maximumf %140, %141 : vector<8x128xf32>
    %143 = math.rsqrt %142 : vector<8x128xf32>
    %144 = arith.mulf %129, %143 : vector<8x128xf32>
    %cst_63 = arith.constant 1.000000e+00 : f32
    %145 = vector.broadcast %cst_63 : f32 to vector<8x128xf32>
    %146 = arith.cmpf ogt, %144, %145 : vector<8x128xf32>
    %cst_64 = arith.constant 0.000000e+00 : f32
    %147 = vector.broadcast %cst_64 : f32 to vector<8x128xf32>
    %148 = arith.cmpf olt, %144, %147 : vector<8x128xf32>
    %149 = arith.ori %146, %148 : vector<8x128xi1>
    %cst_65 = arith.constant 1.000000e+00 : f32
    %150 = vector.broadcast %cst_65 : f32 to vector<8x128xf32>
    %151 = arith.select %149, %150, %144 : vector<8x128xi1>, vector<8x128xf32>
    %152 = arith.addf %118, %151 : vector<8x128xf32>
    %153 = tpu.iota {dimensions = array<i32: 0>} : vector<8x128xi32>
    %154 = tpu.iota {dimensions = array<i32: 1>} : vector<8x128xi32>
    %c8_i32 = arith.constant 8 : i32
    %155 = arith.muli %arg0, %c8_i32 : i32
    %156 = vector.broadcast %155 : i32 to vector<8x128xi32>
    %157 = arith.addi %156, %153 : vector<8x128xi32>
    %c128_i32 = arith.constant 128 : i32
    %158 = vector.broadcast %c128_i32 : i32 to vector<8x128xi32>
    %159 = arith.muli %157, %158 : vector<8x128xi32>
    %160 = arith.addi %159, %154 : vector<8x128xi32>
    %c8_i32_66 = arith.constant 8 : i32
    %161 = vector.broadcast %c8_i32_66 : i32 to vector<8x128xi32>
    %162 = arith.cmpi slt, %160, %161 : vector<8x128xi32>
    %c0_67 = arith.constant 0 : index
    %163 = memref.load %arg3[%c0_67] : memref<2xf32, #tpu.memory_space<smem>>
    %cst_68 = arith.constant 0.000000e+00 : f32
    %164 = vector.broadcast %cst_68 : f32 to vector<8x128xf32>
    %165 = arith.select %162, %85, %164 : vector<8x128xi1>, vector<8x128xf32>
    %166 = vector.shape_cast %165 : vector<8x128xf32> to vector<1x8x128xf32>
    %cst_69 = arith.constant dense<0.000000e+00> : vector<1xf32>
    %167 = vector.multi_reduction <add>, %166, %cst_69 [1, 2] : vector<1x8x128xf32> to vector<1xf32>
    %168 = vector.shape_cast %167 : vector<1xf32> to vector<1x1x1xf32>
    %169 = vector.extract %168[0, 0, 0] : f32 from vector<1x1x1xf32>
    %170 = arith.addf %163, %169 : f32
    %c0_70 = arith.constant 0 : index
    %171 = memref.load %arg3[%c0_70] : memref<2xf32, #tpu.memory_space<smem>>
    memref.store %170, %arg3[%c0_70] : memref<2xf32, #tpu.memory_space<smem>>
    %c1_71 = arith.constant 1 : index
    %172 = memref.load %arg3[%c1_71] : memref<2xf32, #tpu.memory_space<smem>>
    %cst_72 = arith.constant 0.000000e+00 : f32
    %173 = vector.broadcast %cst_72 : f32 to vector<8x128xf32>
    %174 = arith.select %162, %152, %173 : vector<8x128xi1>, vector<8x128xf32>
    %175 = vector.shape_cast %174 : vector<8x128xf32> to vector<1x8x128xf32>
    %cst_73 = arith.constant dense<0.000000e+00> : vector<1xf32>
    %176 = vector.multi_reduction <add>, %175, %cst_73 [1, 2] : vector<1x8x128xf32> to vector<1xf32>
    %177 = vector.shape_cast %176 : vector<1xf32> to vector<1x1x1xf32>
    %178 = vector.extract %177[0, 0, 0] : f32 from vector<1x1x1xf32>
    %179 = arith.addf %172, %178 : f32
    %c1_74 = arith.constant 1 : index
    %180 = memref.load %arg3[%c1_74] : memref<2xf32, #tpu.memory_space<smem>>
    memref.store %179, %arg3[%c1_74] : memref<2xf32, #tpu.memory_space<smem>>
    return
  }
  func.func @transform_0(%arg0: i32) -> (i32, i32, i32) {
    %c0_i32 = arith.constant 0 : i32
    %c0_i32_0 = arith.constant 0 : i32
    %c0_i32_1 = arith.constant 0 : i32
    return %c0_i32, %arg0, %c0_i32_0 : i32, i32, i32
  }
  func.func @transform_1(%arg0: i32) -> (i32, i32, i32) {
    %c0_i32 = arith.constant 0 : i32
    %c0_i32_0 = arith.constant 0 : i32
    %c0_i32_1 = arith.constant 0 : i32
    return %c0_i32, %arg0, %c0_i32_0 : i32, i32, i32
  }
  func.func @transform_2(%arg0: i32) -> i32 {
    %c0_i32 = arith.constant 0 : i32
    %c0_i32_0 = arith.constant 0 : i32
    return %c0_i32 : i32
  }
}

</mosaic_0001>

<bundles_post_ra>
// kernel: tpu_custom_call.1
= control target key start
LH: loop header
LB: loop body
LE: loop exit
PB: predicated region body
PF: predicated region fallthrough
CT: control target
= control target key end

     0   :  { %7 = vsyncpa [#allocation3], 0  ;;  %s432_s0 = inlined_call_operand.hbm [shape: f32[24,8,128], index: 0, kind: input, shape index: {}]   ;;  %s433_s1 = inlined_call_operand.hbm [shape: f32[3,8,128], index: 1, kind: input, shape index: {}]   ;;  %s434_s2 = inlined_call_operand.hbm [shape: f32[2], index: 2, kind: output, shape index: {}]  }
   0x1   :  { %8 = vsyncpa [#allocation6], 0 }
   0x2   :  { %9 = vsyncpa [#allocation4], 0  ;;  %s14_s11 = sshll.u32 %s432_s0, 4  ;;  %s356_s12 = smov [#allocation2]   ;;  %s15_s11 = int_to_ptr.hbm [resolvable:$true] %s14_s11 }
   0x3   :  { %s16_s13 = sshll.u32 %s356_s12, 4  ;;  %s27_s16 = sshll.u32 %s433_s1, 4  ;;  %s17_s13 = int_to_ptr.vmem [resolvable:$true] %s16_s13  ;;  %s28_s16 = int_to_ptr.hbm [resolvable:$true] %s27_s16 }
   0x4   :  { %s357_s17 = smov 128   ;;  %s358_s18 = smov 8  }
   0x5   :  { %22 = dma.hbm_to_vmem [thread:$0]  %s15_s11, 3072, %s17_s13, [#allocation3], %s357_s17, %s357_s17, %s358_s18  }
   0x6   :  { %s359_s19 = smov [#allocation5]  }
   0x7   :  { %s29_s20 = sshll.u32 %s359_s19, 4  ;;  %s30_s20 = int_to_ptr.vmem [resolvable:$true] %s29_s20 }
   0x8   :  { %35 = dma.hbm_to_vmem [thread:$0]  %s28_s16, 384, %s30_s20, [#allocation6], %s357_s17, %s357_s17, %s358_s18  }
   0x9   :  { %350 = dma.done.wait [#allocation3], 3072  }
   0xa   :  { %351 = vsyncadd [#allocation3], 4294964224 }
   0xb   :  { %352 = dma.done.wait [#allocation6], 384  }
   0xc   :  { %353 = vsyncadd [#allocation6], 4294966912  ;;  %v52_v0 = vld [vmem:[#allocation2] sm:$0xff]  ;;  %v54_v1 = vld [vmem:[#allocation2 + $0x8] sm:$0xff]  ;;  %s261_s22 = sshll.u32 %s434_s2, 4  ;;  %s360_s24 = smov [#allocation7]   ;;  %s262_s22 = int_to_ptr.hbm [resolvable:$true] %s261_s22 }
   0xd   :  { %v56_v2 = vld [vmem:[#allocation2 + $0x10] sm:$0xff]  ;;  %v58_v3 = vld [vmem:[#allocation2 + $0x18] sm:$0xff]  ;;  %v60_v4 = vld [vmem:[#allocation2 + $0x20] sm:$0xff] }
   0xe   :  { %v62_v5 = vld [vmem:[#allocation2 + $0x28] sm:$0xff]  ;;  %v64_v6 = vld [vmem:[#allocation2 + $0x30] sm:$0xff]  ;;  %v66_v7 = vld [vmem:[#allocation2 + $0x38] sm:$0xff]  ;;  %v105_v18 = vadd.f32 %v58_v3, %v52_v0  ;;  %v108_v19 = vadd.f32 %v60_v4, %v54_v1 }
   0xf   :  { %v68_v8 = vld [vmem:[#allocation2 + $0x40] sm:$0xff]  ;;  %v70_v9 = vld [vmem:[#allocation2 + $0x48] sm:$0xff]  ;;  %v72_v10 = vld [vmem:[#allocation2 + $0x50] sm:$0xff]  ;;  %v382_v12 = vsub.f32 %v52_v0, %v64_v6  ;;  %v384_v13 = vsub.f32 %v54_v1, %v66_v7  ;;  %v111_v20 = vadd.f32 %v62_v5, %v56_v2 }
  0x10   :  { %v74_v11 = vld [vmem:[#allocation2 + $0x58] sm:$0xff]  ;;  %v386_v14 = vsub.f32 %v56_v2, %v68_v8  ;;  %v76_v15 = vld [vmem:[#allocation2 + $0x60] sm:$0xff]  ;;  %v78_v16 = vld [vmem:[#allocation2 + $0x68] sm:$0xff]  ;;  %v388_v21 = vsub.f32 %v58_v3, %v70_v9  ;;  %v402_v34 = vsub.f32 %v60_v4, %v72_v10 }
  0x11   :  { %v80_v17 = vld [vmem:[#allocation2 + $0x70] sm:$0xff]  ;;  %v82_v22 = vld [vmem:[#allocation2 + $0x78] sm:$0xff]  ;;  %v84_v23 = vld [vmem:[#allocation2 + $0x80] sm:$0xff]  ;;  %v390_v25 = vsub.f32 %v64_v6, %v76_v15  ;;  %v392_v26 = vsub.f32 %v66_v7, %v78_v16  ;;  %v157_v28 = vmul.f32 %v382_v12, %v382_v12  ;;  %v158_v32 = vmul.f32 %v384_v13, %v384_v13 }
  0x12   :  { %v86_v24 = vld [vmem:[#allocation2 + $0x88] sm:$0xff]  ;;  %v394_v27 = vsub.f32 %v68_v8, %v80_v17  ;;  %v88_v29 = vld [vmem:[#allocation2 + $0x90] sm:$0xff]  ;;  %v90_v30 = vld [vmem:[#allocation2 + $0x98] sm:$0xff]  ;;  %v160_v33 = vmul.f32 %v386_v14, %v386_v14  ;;  %v404_v35 = vsub.f32 %v62_v5, %v74_v11  ;;  %v179_v41 = vsub.f32 %v70_v9, %v82_v22 }
  0x13   :  { %v92_v31 = vld [vmem:[#allocation2 + $0xa0] sm:$0xff]  ;;  %v94_v36 = vld [vmem:[#allocation2 + $0xa8] sm:$0xff]  ;;  %v96_v37 = vld [vmem:[#allocation2 + $0xb0] sm:$0xff]  ;;  %v152_v39 = vmul.f32 %v390_v25, %v390_v25  ;;  %v153_v40 = vmul.f32 %v392_v26, %v392_v26  ;;  %v180_v42 = vsub.f32 %v72_v10, %v84_v23  ;;  %v159_v52 = vadd.f32 %v158_v32, %v157_v28 }
  0x14   :  { %v98_v38 = vld [vmem:[#allocation2 + $0xb8] sm:$0xff]  ;;  %v99_v43 = vld [vmem:[#allocation5] sm:$0xff]  ;;  %v101_v44 = vld [vmem:[#allocation5 + $0x8] sm:$0xff]  ;;  %v104_v46 = vadd.f32 %v94_v36, %v88_v29  ;;  %v107_v47 = vadd.f32 %v96_v37, %v90_v30  ;;  %v155_v49 = vmul.f32 %v394_v27, %v394_v27  ;;  %v181_v53 = vsub.f32 %v74_v11, %v86_v24 }
  0x15   :  { %v103_v45 = vld [vmem:[#allocation5 + $0x10] sm:$0xff]  ;;  %v110_v48 = vadd.f32 %v98_v38, %v92_v31  ;;  %v123_v50 = vmul.f32 %v99_v43, %v99_v43  ;;  %v124_v51 = vmul.f32 %v101_v44, %v101_v44  ;;  %v154_v57 = vadd.f32 %v153_v40, %v152_v39 }
  0x16   :  { %v106_v54 = vsub.f32 %v104_v46, %v105_v18  ;;  %v109_v55 = vsub.f32 %v107_v47, %v108_v19  ;;  %v126_v59 = vmul.f32 %v103_v45, %v103_v45  ;;  %v190_v60 = vmul.f32 %v179_v41, %v179_v41 }
  0x17   :  { %v112_v56 = vsub.f32 %v110_v48, %v111_v20  ;;  %v125_v58 = vadd.f32 %v124_v51, %v123_v50  ;;  %v191_v61 = vmul.f32 %v180_v42, %v180_v42  ;;  %v161_v1 = vadd.f32 %v160_v33, %v159_v52 }
  0x18   :  { %v118_v62 = vmul.f32 %v106_v54, %v106_v54  ;;  %v119_v63 = vmul.f32 %v109_v55, %v109_v55  ;;  %v156_v3 = vadd.f32 %v155_v49, %v154_v57  ;;  %v193_v4 = vmul.f32 %v181_v53, %v181_v53 }
  0x19   :  { %v121_v0 = vmul.f32 %v112_v56, %v112_v56  ;;  %v192_v2 = vadd.f32 %v191_v61, %v190_v60  ;;  %v195_v5 = vmul.f32 %v388_v21, %v388_v21  ;;  %v196_v6 = vmul.f32 %v402_v34, %v402_v34 }
  0x1a   :  { %v120_v7 = vadd.f32 %v119_v63, %v118_v62  ;;  %v127_v8 = vadd.f32 %v126_v59, %v125_v58  ;;  %v198_v9 = vmul.f32 %v404_v35, %v404_v35  ;;  %v162_v17 = vmul.f32 %v161_v1, %v156_v3 }
  0x1b   :  { %v194_v10 = vadd.f32 %v193_v4, %v192_v2  ;;  %v197_v11 = vadd.f32 %v196_v6, %v195_v5  ;;  %v218_v24 = vlaneseq  ;;  %v113_v28 = vmul.f32 %v106_v54, %v99_v43 }
  0x1c   :  { %v122_v15 = vadd.f32 %v121_v0, %v120_v7  ;;  %v163_v19 = vmax.f32 %v162_v17, 1e-16  ;;  %v114_v29 = vmul.f32 %v109_v55, %v101_v44  ;;  %v147_v32 = vmul.f32 %v382_v12, %v390_v25 }
  0x1d   :  { %v199_v16 = vadd.f32 %v198_v9, %v197_v11  ;;  %v219_v30 = vshrl.u32 %v218_v24, 7  ;;  %v148_v33 = vmul.f32 %v384_v13, %v392_v26  ;;  %v116_v37 = vmul.f32 %v112_v56, %v103_v45 }
  0x1e   :  { %v128_v18 = vmul.f32 %v127_v8, %v122_v15  ;;  %284 = vrsqrt.f32 %v163_v19  ;;  %v115_v40 = vadd.f32 %v114_v29, %v113_v28  ;;  %v185_v47 = vmul.f32 %v388_v21, %v179_v41 }
  0x1f   :  { %v200_v20 = vmul.f32 %v199_v16, %v194_v10  ;;  %v186_v48 = vmul.f32 %v402_v34, %v180_v42  ;;  %v221_v43 = vand.u32 127, %v218_v24  ;;  %v225_v44 = vmul.u32 128, %v219_v30 }
  0x20   :  { %v129_v22 = vmax.f32 %v128_v18, 1e-16  ;;  %v149_v52 = vadd.f32 %v148_v33, %v147_v32  ;;  %v150_v12 = vmul.f32 %v386_v14, %v394_v27  ;;  %v188_v13 = vmul.f32 %v404_v35, %v181_v53 }
  0x21   :  { %v201_v23 = vmax.f32 %v200_v20, 1e-16  ;;  %vm170_vm0 = vweird.f32 %v163_v19  ;;  %v187_v21 = vadd.f32 %v186_v48, %v185_v47  ;;  %v226_v54 = vadd.s32 %v225_v44, %v221_v43 }
  0x22   :  { %286 = vrsqrt.f32 %v129_v22  ;;  %vm136_vm2 = vweird.f32 %v129_v22  ;;  %v151_v55 = vadd.f32 %v150_v12, %v149_v52  ;;  %v117_v56 = vadd.f32 %v116_v37, %v115_v40 }
  0x23   :  { %288 = vrsqrt.f32 %v201_v23  ;;  %vm208_vm4 = vweird.f32 %v201_v23  ;;  %v189_v53 = vadd.f32 %v188_v13, %v187_v21  ;;  %vm227_vm9 = vcmp.lt.s32.totalorder %v226_v54, 8 }
  0x24   :  { %v285_v31 = vpop.eup %284 }
  0x25   :  { %v165_v38 = vmul.f32 %v285_v31, %v163_v19  ;;  %vm171_vm1 = vweird.f32 %v285_v31 }
  0x26   :  { %vm172_vm6 = vmor %vm170_vm0, %vm171_vm1 }
  0x27   :  { %v166_v49 = vmul.f32 %v285_v31, %v165_v38 }
  0x28   :  { %v287_v36 = vpop.eup %286 }
  0x29   :  { %v289_v39 = vpop.eup %288  ;;  %v131_v46 = vmul.f32 %v287_v36, %v129_v22  ;;  %v167_v25 = vmul.f32 0.5, %v166_v49  ;;  %vm137_vm3 = vweird.f32 %v287_v36 }
  0x2a   :  { %v203_v50 = vmul.f32 %v289_v39, %v201_v23  ;;  %vm209_vm5 = vweird.f32 %v289_v39  ;;  %vm138_vm7 = vmor %vm136_vm2, %vm137_vm3 }
  0x2b   :  { %v132_v51 = vmul.f32 %v287_v36, %v131_v46  ;;  %v168_v34 = vsub.f32 1.5, %v167_v25  ;;  %vm210_vm8 = vmor %vm208_vm4, %vm209_vm5 }
  0x2c   :  { %v204_v26 = vmul.f32 %v289_v39, %v203_v50 }
  0x2d   :  { %v133_v45 = vmul.f32 0.5, %v132_v51  ;;  %v169_v14 = vmul.f32 %v285_v31, %v168_v34 }
  0x2e   :  { %v205_v41 = vmul.f32 0.5, %v204_v26 }
  0x2f   :  { %v134_v42 = vsub.f32 1.5, %v133_v45  ;;  %v173_v57 = vsel %vm172_vm6, %v285_v31, %v169_v14 }
  0x30   :  { %v206_v27 = vsub.f32 1.5, %v205_v41  ;;  %v174_v60 = vmul.f32 %v173_v57, %v151_v55 }
  0x31   :  { %v135_v35 = vmul.f32 %v287_v36, %v134_v42 }
  0x32   :  { %v207_v58 = vmul.f32 %v289_v39, %v206_v27  ;;  %vm175_vm10 = vcmp.gt.f32.partialorder %v174_v60, 1.0  ;;  %vm176_vm11 = vcmp.lt.f32.partialorder %v174_v60, 0.0 }
  0x33   :  { %v139_v59 = vsel %vm138_vm7, %v287_v36, %v135_v35  ;;  %vm177_vm12 = vmor %vm175_vm10, %vm176_vm11 }
  0x34   :  { %v140_v61 = vmul.f32 %v139_v59, %v117_v56  ;;  %v211_v62 = vsel %vm210_vm8, %v289_v39, %v207_v58  ;;  %v178_v1 = vsel %vm177_vm12, 1.0, %v174_v60 }
  0x35   :  { %v212_v63 = vmul.f32 %v211_v62, %v189_v53 }
  0x36   :  { %v229_v0 = vsel %vm227_vm9, %v140_v61, 0.0 }
  0x37   :  { %230 = vadd.xlane.f32.xlu0 %v229_v0  ;;  %vm213_vm13 = vcmp.gt.f32.partialorder %v212_v63, 1.0  ;;  %vm214_vm14 = vcmp.lt.f32.partialorder %v212_v63, 0.0 }
  0x38   :  { %vm215_vm15 = vmor %vm213_vm13, %vm214_vm14 }
  0x39   :  { %v216_v2 = vsel %vm215_vm15, 1.0, %v212_v63 }
  0x3a   :  { %v217_v3 = vadd.f32 %v216_v2, %v178_v1 }
  0x3c   :  { %v243_v4 = vsel %vm227_vm9, %v217_v3, 0.0 }
  0x3f   :  { %244 = vadd.xlane.f32.xlu0 %v243_v4 }
  0xaa   :  { %v231_v5 = vpop.xlane.xlu0 %230 }
  0xab   :  { %v232_v6 = vrot.slane %v231_v5, 4 }
  0xad   :  { %v233_v7 = vadd.f32 %v232_v6, %v231_v5 }
  0xaf   :  { %v234_v8 = vrot.slane %v233_v7, 2 }
  0xb1   :  { %v235_v9 = vadd.f32 %v234_v8, %v233_v7 }
  0xb2   :  { %v245_v10 = vpop.xlane.xlu0 %244 }
  0xb3   :  { %v246_v11 = vrot.slane %v245_v10, 4  ;;  %v236_v15 = vrot.slane %v235_v9, 1 }
  0xb5   :  { %v247_v16 = vadd.f32 %v246_v11, %v245_v10  ;;  %v237_v17 = vadd.f32 %v236_v15, %v235_v9 }
  0xb7   :  { %v248_v18 = vrot.slane %v247_v16, 2  ;;  %274 = vpush %v237_v17 }
  0xb9   :  { %v249_v19 = vadd.f32 %v248_v18, %v247_v16 }
  0xbb   :  { %v250_v20 = vrot.slane %v249_v19, 1 }
  0xbd   :  { %v251_v22 = vadd.f32 %v250_v20, %v249_v19 }
  0xbf   :  { %276 = vpush %v251_v22 }
  0xe8   :  { %s275_s0 = spop %274 }
  0xe9   :  { %241 = sst [smem:[#allocation7]] %s275_s0 }
  0xf0   :  { %s277_s23 = spop %276 }
  0xf1   :  { %255 = sst [smem:[#allocation7 + $0x1]] %s277_s23 }
  0xf2   :  { %264 = dma.smem_to_hbm %s360_s24, 16, %s262_s22, [#allocation4]  }
  0xf3   :  { %354 = dma.done.wait [#allocation4], 16  }
  0xf4   :  { %355 = vsyncadd [#allocation4], 4294967280 }
  0xf5   :  { %269 = sfence }
  0xf6   :  { %270 = vsyncpa [#allocation3], 1 }
  0xf7   :  { %271 = vsyncpa [#allocation6], 1 }
  0xf8   :  { %272 = vsyncpa [#allocation4], 1 }

</bundles_post_ra>
